<compile_context>
chip_gen: v5e
topology: v5e:2x2
jax: 0.10.0
libtpu: 0.0.40
codegen_flags: <defaults>
</compile_context>

<pallas_src>
import jax
import jax.numpy as jnp
from jax.experimental import pallas as pl
from jax.experimental import pallas as _pl_unused  # noqa: F401
from jax.experimental.pallas import tpu as pltpu  # noqa: F401  (not needed: single-block kernel)

LANES = 128  # lane width; all weight out-dims are zero-padded to this


def encoder_kernel(x_ref, w_ref, b_ref, out_ref):
    """x:[B,I] f32, w:[I+3*P, P] bf16 (rows: w1|w2|w3|w_head, all zero-padded
    to P=128 lanes), b:[4,P] f32 (rows: b1,b2,b3,b_head), out:[B,P] f32."""
    i_sz = x_ref.shape[1]
    p = out_ref.shape[1]
    bf = w_ref.dtype

    # fc1 -> bias -> relu   (dropout = identity in eval mode)
    h = jnp.dot(x_ref[...].astype(bf), w_ref[0:i_sz, :],
                preferred_element_type=jnp.float32)
    h = jnp.maximum(h + b_ref[0:1, :], 0.0)

    # fc2 -> bias -> relu
    h = jnp.dot(h.astype(bf), w_ref[i_sz:i_sz + p, :],
                preferred_element_type=jnp.float32)
    h = jnp.maximum(h + b_ref[1:2, :], 0.0)

    # fc3 -> bias -> relu
    h = jnp.dot(h.astype(bf), w_ref[i_sz + p:i_sz + 2 * p, :],
                preferred_element_type=jnp.float32)
    h = jnp.maximum(h + b_ref[2:3, :], 0.0)

    # fused mean|logvar head: one matmul, one unmasked lane-dense (B, P) store.
    out = jnp.dot(h.astype(bf), w_ref[i_sz + 2 * p:i_sz + 3 * p, :],
                  preferred_element_type=jnp.float32)
    out_ref[...] = out + b_ref[3:4, :]


def _pad2d(a, rows, cols):
    return jnp.pad(a, ((0, rows - a.shape[0]), (0, cols - a.shape[1])))


def prepack_params(params, lanes=LANES):
    """One-time packing: weights -> single bf16 [I + 3*lanes, lanes] slab,
    biases -> single f32 [4, lanes] slab.  Done once at init, NOT per call."""
    input_size = params["w1"].shape[0]
    hidden = params["w1"].shape[1]
    latent = params["wm"].shape[1]
    assert hidden <= lanes and 2 * latent <= lanes, "pad scheme needs dims <= 128"
    assert input_size % 16 == 0, "w1 row block must be bf16-sublane aligned"

    w1p = _pad2d(params["w1"], input_size, lanes)                       # [I, P]
    w2p = _pad2d(params["w2"], lanes, lanes)                            # [P, P]
    w3p = _pad2d(params["w3"], lanes, lanes)                            # [P, P]
    wh = jnp.concatenate([params["wm"], params["wv"]], axis=1)          # [H, 2L]
    whp = _pad2d(wh, lanes, lanes)                                      # [P, P]
    w_slab = jnp.concatenate([w1p, w2p, w3p, whp], axis=0).astype(jnp.bfloat16)

    b_head = jnp.concatenate([params["bm"], params["bv"]], axis=1)      # [1, 2L]
    b_pack = jnp.concatenate(
        [_pad2d(params["b1"], 1, lanes), _pad2d(params["b2"], 1, lanes),
         _pad2d(params["b3"], 1, lanes), _pad2d(b_head, 1, lanes)],
        axis=0).astype(jnp.float32)                                     # [4, P]

    return {"w": w_slab, "b": b_pack}


def make_encoder_forward(latent_dim):
    """Returns jitted forward(x, w_slab, b_pack) -> (mean, logvar)."""

    @jax.jit
    def fwd(x, w_slab, b_pack):
        batch = x.shape[0]
        lanes = w_slab.shape[1]
        out = pl.pallas_call(
            encoder_kernel,
            out_shape=jax.ShapeDtypeStruct((batch, lanes), jnp.float32),
        )(x, w_slab, b_pack)
        return out[:, :latent_dim], out[:, latent_dim:2 * latent_dim]

    return fwd


def init_params(key, input_size, hidden_size, latent_dim):
    """Deterministic synthetic init (PyTorch-style uniform(+-1/sqrt(fan_in)))."""
    def linear(key, fan_in, fan_out):
        kw, kb = jax.random.split(key)
        bound = 1.0 / jnp.sqrt(fan_in)
        # stored as [in, out] (transposed vs torch's [out, in])
        w = jax.random.uniform(kw, (fan_in, fan_out), jnp.float32, -bound, bound)
        b = jax.random.uniform(kb, (1, fan_out), jnp.float32, -bound, bound)
        return w, b

    keys = jax.random.split(key, 5)
    w1, b1 = linear(keys[0], input_size, hidden_size)
    w2, b2 = linear(keys[1], hidden_size, hidden_size)
    w3, b3 = linear(keys[2], hidden_size, hidden_size)
    wm, bm = linear(keys[3], hidden_size, latent_dim)
    wv, bv = linear(keys[4], hidden_size, latent_dim)
    return dict(w1=w1, b1=b1, w2=w2, b2=b2, w3=w3, b3=b3,
                wm=wm, bm=bm, wv=wv, bv=bv)


def encoder_reference(x, p):
    """Pure-JAX reference with the same bf16-operand / f32-accumulate numerics."""
    bf = jnp.bfloat16

    def lin(h, w, b):
        return jnp.dot(h.astype(bf), w.astype(bf),
                       preferred_element_type=jnp.float32) + b

    h = jnp.maximum(lin(x, p["w1"], p["b1"]), 0.0)
    h = jnp.maximum(lin(h, p["w2"], p["b2"]), 0.0)
    h = jnp.maximum(lin(h, p["w3"], p["b3"]), 0.0)
    return lin(h, p["wm"], p["bm"]), lin(h, p["wv"], p["bv"])


if __name__ == "__main__":
    input_size, hidden_size, latent_dim = 32, 64, 16
    batch = 8

    key = jax.random.PRNGKey(0)
    k_x, k_p = jax.random.split(key)
    x = jax.random.normal(k_x, (batch, input_size), jnp.float32)
    params = init_params(k_p, input_size, hidden_size, latent_dim)

    # One-time prepack (hoisted out of the per-call forward path).
    packed = prepack_params(params)
    forward = make_encoder_forward(latent_dim)

    mean, logvar = forward(x, packed["w"], packed["b"])
    jax.block_until_ready((mean, logvar))

    ref_mean, ref_logvar = encoder_reference(x, params)
    assert mean.shape == (batch, latent_dim)
    assert logvar.shape == (batch, latent_dim)
    assert jnp.allclose(mean, ref_mean, atol=2e-3, rtol=2e-3)
    assert jnp.allclose(logvar, ref_logvar, atol=2e-3, rtol=2e-3)

    print("KERNEL_OK")
</pallas_src>

<mosaic_0001>
module attributes {stable_mosaic.version = 11 : i64} {
  func.func @encoder_kernel(%arg0: memref<8x32xf32, #tpu.memory_space<vmem>>, %arg1: memref<416x128xbf16, #tpu.memory_space<vmem>>, %arg2: memref<4x128xf32, #tpu.memory_space<vmem>>, %arg3: memref<8x128xf32, #tpu.memory_space<vmem>>) attributes {dimension_semantics = [], scalar_prefetch = 0 : i64, scratch_operands = 0 : i64, tpu.core_type = #tpu.core_type<tc>} {
    %c0 = arith.constant 0 : index
    %c0_0 = arith.constant 0 : index
    %0 = vector.load %arg0[%c0, %c0_0] : memref<8x32xf32, #tpu.memory_space<vmem>>, vector<8x32xf32>
    %1 = arith.truncf %0 : vector<8x32xf32> to vector<8x32xbf16>
    %c0_1 = arith.constant 0 : index
    %c0_2 = arith.constant 0 : index
    %2 = vector.load %arg1[%c0_1, %c0_2] : memref<416x128xbf16, #tpu.memory_space<vmem>>, vector<32x128xbf16>
    %cst = arith.constant dense<0.000000e+00> : vector<8x128xf32>
    %3 = tpu.matmul %1, %2, %cst {dimension_numbers = #tpu.dot_dimension_numbers<[1], [0], [0], [1], [0, 0, 1, 1], [], []>} : vector<8x32xbf16>, vector<32x128xbf16>, vector<8x128xf32> -> vector<8x128xf32>
    %c0_3 = arith.constant 0 : index
    %c0_4 = arith.constant 0 : index
    %4 = vector.load %arg2[%c0_3, %c0_4] : memref<4x128xf32, #tpu.memory_space<vmem>>, vector<1x128xf32>
    %5 = vector.broadcast %4 : vector<1x128xf32> to vector<8x128xf32>
    %6 = arith.addf %3, %5 : vector<8x128xf32>
    %cst_5 = arith.constant 0.000000e+00 : f32
    %7 = vector.broadcast %cst_5 : f32 to vector<8x128xf32>
    %8 = arith.maximumf %6, %7 : vector<8x128xf32>
    %9 = arith.truncf %8 : vector<8x128xf32> to vector<8x128xbf16>
    %c32 = arith.constant 32 : index
    %c0_6 = arith.constant 0 : index
    %10 = vector.load %arg1[%c32, %c0_6] : memref<416x128xbf16, #tpu.memory_space<vmem>>, vector<128x128xbf16>
    %cst_7 = arith.constant dense<0.000000e+00> : vector<8x128xf32>
    %11 = tpu.matmul %9, %10, %cst_7 {dimension_numbers = #tpu.dot_dimension_numbers<[1], [0], [0], [1], [0, 0, 1, 1], [], []>} : vector<8x128xbf16>, vector<128x128xbf16>, vector<8x128xf32> -> vector<8x128xf32>
    %c1 = arith.constant 1 : index
    %c0_8 = arith.constant 0 : index
    %12 = vector.load %arg2[%c1, %c0_8] : memref<4x128xf32, #tpu.memory_space<vmem>>, vector<1x128xf32>
    %13 = vector.broadcast %12 : vector<1x128xf32> to vector<8x128xf32>
    %14 = arith.addf %11, %13 : vector<8x128xf32>
    %cst_9 = arith.constant 0.000000e+00 : f32
    %15 = vector.broadcast %cst_9 : f32 to vector<8x128xf32>
    %16 = arith.maximumf %14, %15 : vector<8x128xf32>
    %17 = arith.truncf %16 : vector<8x128xf32> to vector<8x128xbf16>
    %c160 = arith.constant 160 : index
    %c0_10 = arith.constant 0 : index
    %18 = vector.load %arg1[%c160, %c0_10] : memref<416x128xbf16, #tpu.memory_space<vmem>>, vector<128x128xbf16>
    %cst_11 = arith.constant dense<0.000000e+00> : vector<8x128xf32>
    %19 = tpu.matmul %17, %18, %cst_11 {dimension_numbers = #tpu.dot_dimension_numbers<[1], [0], [0], [1], [0, 0, 1, 1], [], []>} : vector<8x128xbf16>, vector<128x128xbf16>, vector<8x128xf32> -> vector<8x128xf32>
    %c2 = arith.constant 2 : index
    %c0_12 = arith.constant 0 : index
    %20 = vector.load %arg2[%c2, %c0_12] : memref<4x128xf32, #tpu.memory_space<vmem>>, vector<1x128xf32>
    %21 = vector.broadcast %20 : vector<1x128xf32> to vector<8x128xf32>
    %22 = arith.addf %19, %21 : vector<8x128xf32>
    %cst_13 = arith.constant 0.000000e+00 : f32
    %23 = vector.broadcast %cst_13 : f32 to vector<8x128xf32>
    %24 = arith.maximumf %22, %23 : vector<8x128xf32>
    %25 = arith.truncf %24 : vector<8x128xf32> to vector<8x128xbf16>
    %c288 = arith.constant 288 : index
    %c0_14 = arith.constant 0 : index
    %26 = vector.load %arg1[%c288, %c0_14] : memref<416x128xbf16, #tpu.memory_space<vmem>>, vector<128x128xbf16>
    %cst_15 = arith.constant dense<0.000000e+00> : vector<8x128xf32>
    %27 = tpu.matmul %25, %26, %cst_15 {dimension_numbers = #tpu.dot_dimension_numbers<[1], [0], [0], [1], [0, 0, 1, 1], [], []>} : vector<8x128xbf16>, vector<128x128xbf16>, vector<8x128xf32> -> vector<8x128xf32>
    %c3 = arith.constant 3 : index
    %c0_16 = arith.constant 0 : index
    %28 = vector.load %arg2[%c3, %c0_16] : memref<4x128xf32, #tpu.memory_space<vmem>>, vector<1x128xf32>
    %29 = vector.broadcast %28 : vector<1x128xf32> to vector<8x128xf32>
    %30 = arith.addf %27, %29 : vector<8x128xf32>
    %c0_17 = arith.constant 0 : index
    %c0_18 = arith.constant 0 : index
    %31 = vector.load %arg3[%c0_17, %c0_18] : memref<8x128xf32, #tpu.memory_space<vmem>>, vector<8x128xf32>
    tpu.vector_store %arg3[%c0_17, %c0_18], %30 {strides = array<i32>} : memref<8x128xf32, #tpu.memory_space<vmem>>, vector<8x128xf32>,
    return
  }
}

</mosaic_0001>

<bundles_post_ra>
// kernel: fwd.1
= control target key start
LH: loop header
LB: loop body
LE: loop exit
PB: predicated region body
PF: predicated region fallthrough
CT: control target
= control target key end

     0   :  { %8 = vsyncpa [#allocation3], 0  ;;  %s598_s0 = inlined_call_operand.hbm [shape: f32[8,32], index: 0, kind: input, shape index: {}]   ;;  %s599_s1 = inlined_call_operand.hbm [shape: bf16[416,128], index: 1, kind: input, shape index: {}]   ;;  %s600_s2 = inlined_call_operand.hbm [shape: f32[4,128], index: 2, kind: input, shape index: {}]   ;;  %s601_s3 = inlined_call_operand.vmem [shape: f32[8,128], index: 3, kind: output, shape index: {}]  }
   0x1   :  { %9 = vsyncpa [#allocation5], 0  ;;  %s25_s14 = sshll.u32 %s599_s1, 4  ;;  %s561_s15 = smov [#allocation4]   ;;  %s26_s14 = int_to_ptr.hbm [resolvable:$true] %s25_s14 }
   0x2   :  { %s27_s16 = sshll.u32 %s561_s15, 4  ;;  %s15_s19 = sshll.u32 %s598_s0, 4  ;;  %s28_s16 = int_to_ptr.vmem [resolvable:$true] %s27_s16  ;;  %s16_s19 = int_to_ptr.hbm [resolvable:$true] %s15_s19 }
   0x3   :  { %s562_s20 = smov 64   ;;  %s563_s21 = smov 4  }
   0x4   :  { %33 = dma.hbm_to_vmem [thread:$0]  %s26_s14, 3328, %s28_s16, [#allocation5], %s562_s20, %s562_s20, %s563_s21  }
   0x5   :  { %s564_s22 = smov [#allocation2]   ;;  %s39_s26 = sshll.u32 %s600_s2, 4  ;;  %s40_s26 = int_to_ptr.hbm [resolvable:$true] %s39_s26 }
   0x6   :  { %s17_s23 = sshll.u32 %s564_s22, 4  ;;  %s565_s1 = smov [#allocation6]   ;;  %s18_s23 = int_to_ptr.vmem [resolvable:$true] %s17_s23 }
   0x7   :  { %20 = dma.hbm_to_vmem [thread:$0]  %s16_s19, 128, %s18_s23, [#allocation3]  }
   0x8   :  { %s41_s27 = sshll.u32 %s565_s1, 4  ;;  %s42_s27 = int_to_ptr.vmem [resolvable:$true] %s41_s27 }
   0x9   :  { %44 = dma.hbm_to_vmem [thread:$0]  %s40_s26, 64, %s42_s27, [#allocation5]  }
   0xa   :  { %557 = dma.done.wait [#allocation3], 128  }
   0xb   :  { %558 = vsyncadd [#allocation3], 4294967168 }
   0xc   :  { %559 = dma.done.wait [#allocation5], 3392  }
   0xd   :  { %560 = vsyncadd [#allocation5], 4294963904  ;;  %v451_v0 = vld [vmem:[#allocation4 + $0x8] sm:$0xff]  ;;  %v450_v2 = vld [vmem:[#allocation4] sm:$0xff]  ;;  %vm78_vm0 = vcmask 261120  }
   0xe   :  { %v459_v1 = vld [vmem:[#allocation4 + $0x48] sm:$0xff]  ;;  %88 = vmatpush.bf16.msra.mxu0 %v451_v0  ;;  %v58_v3 = vld [vmem:[#allocation2] sm:$0xff]  ;;  %v458_v4 = vld [vmem:[#allocation4 + $0x40] sm:$0xff] }
   0xf   :  { %163 = vmatpush.bf16.msra.mxu1 %v459_v1  ;;  %v59_v5 = vpack.c.bf16 %v58_v3, %v58_v3  ;;  %v457_v6 = vld [vmem:[#allocation4 + $0x38] sm:$0xff]  ;;  %v456_v7 = vld [vmem:[#allocation4 + $0x30] sm:$0xff]  ;;  %v455_v8 = vld [vmem:[#allocation4 + $0x28] sm:$0xff] }
  0x10   :  { %v454_v9 = vld [vmem:[#allocation4 + $0x20] sm:$0xff]  ;;  %v453_v10 = vld [vmem:[#allocation4 + $0x18] sm:$0xff]  ;;  %v452_v11 = vld [vmem:[#allocation4 + $0x10] sm:$0xff] }
  0x11   :  { %v467_v12 = vld [vmem:[#allocation4 + $0x88] sm:$0xff]  ;;  %v466_v13 = vld [vmem:[#allocation4 + $0x80] sm:$0xff]  ;;  %v465_v14 = vld [vmem:[#allocation4 + $0x78] sm:$0xff] }
  0x12   :  { %89 = vmatpush.bf16.msra.mxu0 %v450_v2  ;;  %244 = vmatpush.bf16.msra.mxu2 %v467_v12  ;;  %v464_v15 = vld [vmem:[#allocation4 + $0x70] sm:$0xff]  ;;  %v463_v16 = vld [vmem:[#allocation4 + $0x68] sm:$0xff]  ;;  %v462_v17 = vld [vmem:[#allocation4 + $0x60] sm:$0xff] }
  0x13   :  { %164 = vmatpush.bf16.msra.mxu1 %v458_v4  ;;  %v481_v18 = vld [vmem:[#allocation6] ss:$0 sm:$0xff]  ;;  %v461_v24 = vld [vmem:[#allocation4 + $0x58] sm:$0xff]  ;;  %v475_v26 = vld [vmem:[#allocation4 + $0xc8] sm:$0xff] }
  0x14   :  { %v460_v25 = vld [vmem:[#allocation4 + $0x50] sm:$0xff]  ;;  %325 = vmatpush.bf16.msra.mxu3 %v475_v26  ;;  %v474_v27 = vld [vmem:[#allocation4 + $0xc0] sm:$0xff]  ;;  %v473_v28 = vld [vmem:[#allocation4 + $0xb8] sm:$0xff] }
  0x15   :  { %353 = vmatmul.msk.bf16.vlgmr.msra.gmra.mxu0 %vm78_vm0, %v59_v5  ;;  %v472_v29 = vld [vmem:[#allocation4 + $0xb0] sm:$0xff]  ;;  %v471_v30 = vld [vmem:[#allocation4 + $0xa8] sm:$0xff]  ;;  %v470_v31 = vld [vmem:[#allocation4 + $0xa0] sm:$0xff] }
  0x16   :  { %245 = vmatpush.bf16.msra.mxu2 %v466_v13  ;;  %v482_v32 = vld [vmem:[#allocation6 + $0x1] ss:$0 sm:$0xff]  ;;  %v469_v38 = vld [vmem:[#allocation4 + $0x98] sm:$0xff]  ;;  %v483_v40 = vld [vmem:[#allocation6 + $0x2] ss:$0 sm:$0xff] }
  0x17   :  { %165 = vmatpush.bf16.msra.mxu1 %v457_v6  ;;  %v468_v39 = vld [vmem:[#allocation4 + $0x90] sm:$0xff] }
  0x18   :  { %326 = vmatpush.bf16.msra.mxu3 %v474_v27  ;;  %v484_v46 = vld [vmem:[#allocation6 + $0x3] ss:$0 sm:$0xff] }
  0x1a   :  { %246 = vmatpush.bf16.msra.mxu2 %v465_v14 }
  0x1b   :  { %166 = vmatpush.bf16.msra.mxu1 %v456_v7 }
  0x1c   :  { %327 = vmatpush.bf16.msra.mxu3 %v473_v28 }
  0x1e   :  { %247 = vmatpush.bf16.msra.mxu2 %v464_v15 }
  0x1f   :  { %167 = vmatpush.bf16.msra.mxu1 %v455_v8 }
  0x20   :  { %328 = vmatpush.bf16.msra.mxu3 %v472_v29 }
  0x22   :  { %248 = vmatpush.bf16.msra.mxu2 %v463_v16 }
  0x23   :  { %168 = vmatpush.bf16.msra.mxu1 %v454_v9 }
  0x24   :  { %329 = vmatpush.bf16.msra.mxu3 %v471_v30 }
  0x26   :  { %249 = vmatpush.bf16.msra.mxu2 %v462_v17 }
  0x27   :  { %169 = vmatpush.bf16.msra.mxu1 %v453_v10 }
  0x28   :  { %330 = vmatpush.bf16.msra.mxu3 %v470_v31 }
  0x2a   :  { %250 = vmatpush.bf16.msra.mxu2 %v461_v24 }
  0x2b   :  { %170 = vmatpush.bf16.msra.mxu1 %v452_v11 }
  0x2c   :  { %331 = vmatpush.bf16.msra.mxu3 %v469_v38 }
  0x2e   :  { %251 = vmatpush.bf16.msra.mxu2 %v460_v25 }
  0x30   :  { %332 = vmatpush.bf16.msra.mxu3 %v468_v39 }
  0x92   :  { %v91_v19 = vpop.f32.mrf.mxu0 }
  0x93   :  { %v92_v20 = vadd.f32 %v481_v18, %v91_v19 }
  0x95   :  { %v95_v21 = vmax.f32 %v92_v20, 0.0 }
  0x97   :  { %v96_v22 = vpack.c.bf16 %v95_v21, %v95_v21 }
  0x99   :  { %171 = vmatmul.bf16.vlgmr.msra.gmra.mxu1 %v96_v22 }
  0x9a   :  { %v93_v23 = vpop.f32.mrf.mxu0 }
 0x116   :  { %v172_v33 = vpop.f32.mrf.mxu1 }
 0x117   :  { %v173_v34 = vadd.f32 %v482_v32, %v172_v33 }
 0x119   :  { %v176_v35 = vmax.f32 %v173_v34, 0.0 }
 0x11b   :  { %v177_v36 = vpack.c.bf16 %v176_v35, %v176_v35 }
 0x11d   :  { %252 = vmatmul.bf16.vlgmr.msra.gmra.mxu2 %v177_v36 }
 0x11e   :  { %v174_v37 = vpop.f32.mrf.mxu1 }
 0x1a0   :  { %v253_v41 = vpop.f32.mrf.mxu2 }
 0x1a1   :  { %v254_v42 = vadd.f32 %v483_v40, %v253_v41 }
 0x1a3   :  { %v257_v43 = vmax.f32 %v254_v42, 0.0 }
 0x1a5   :  { %v258_v44 = vpack.c.bf16 %v257_v43, %v257_v43 }
 0x1a7   :  { %333 = vmatmul.bf16.vlgmr.msra.gmra.mxu3 %v258_v44 }
 0x1a8   :  { %v255_v45 = vpop.f32.mrf.mxu2 }
 0x22a   :  { %v334_v47 = vpop.f32.mrf.mxu3 }
 0x22b   :  { %v335_v48 = vadd.f32 %v484_v46, %v334_v47 }
 0x22d   :  { %338 = vst [vmem:[%s601_s3] sm:$0xff] %v335_v48 }
 0x232   :  { %v336_v49 = vpop.f32.mrf.mxu3 }
 0x233   :  { %343 = vsyncpa [#allocation3], 1 }
 0x234   :  { %344 = vsyncpa [#allocation5], 1 }

</bundles_post_ra>
